<compile_context>
chip_gen: v5e
topology: v5e:2x2
jax: 0.10.0
libtpu: 0.0.40
codegen_flags: <defaults>
</compile_context>

<pallas_src>
import functools
import math

import jax
import jax.numpy as jnp
from jax.experimental import pallas as pl
from jax.experimental.pallas import tpu as pltpu


def _fused_self_attention_kernel(q_ref, k_ref, v_ref, wq_ref, wk_ref, wv_ref,
                                 wfc_ref, bfc_ref, o_ref, *, batch, heads):
    # q/k/v refs: (N*S, E) flattened slabs.  Weight refs: block-diagonal (E, E)
    # per-head W.T replicas (wq carries the 1/sqrt(E) scale), fc weight (E, E)
    # pre-transposed, bias (1, E).
    NSq, E = q_ref.shape
    NSk = k_ref.shape[0]
    D = E // heads
    Sq = NSq // batch
    Sk = NSk // batch

    # All-heads / all-batch projections: one lane-dense MXU matmul each
    # (no per-head loop, no in-kernel transpose, scale pre-folded into wq).
    qp = jnp.dot(q_ref[...], wq_ref[...], preferred_element_type=jnp.float32)
    kp = jnp.dot(k_ref[...], wk_ref[...], preferred_element_type=jnp.float32)
    vp = jnp.dot(v_ref[...], wv_ref[...], preferred_element_type=jnp.float32)

    # Split the batch back out along sublanes (lane dim untouched, Sq/Sk are
    # multiples of the 8-sublane tile -> layout-free reshape).
    qp3 = qp.reshape(batch, Sq, E)
    kp3 = kp.reshape(batch, Sk, E)
    vp3 = vp.reshape(batch, Sk, E)

    # fc_out distributed over heads: no lane-dim concatenate needed.
    y = jnp.zeros((NSq, E), jnp.float32)
    for h in range(heads):                        # static unroll; heads is small
        sl = slice(h * D, (h + 1) * D)
        s = jnp.einsum('nqd,nkd->nqk', qp3[..., sl], kp3[..., sl],
                       preferred_element_type=jnp.float32)        # (N, Sq, Sk)
        m = jnp.max(s, axis=-1, keepdims=True)
        p = jnp.exp(s - m)
        attn = p / jnp.sum(p, axis=-1, keepdims=True)             # exact softmax
        ctx = jnp.einsum('nqk,nkd->nqd', attn, vp3[..., sl],
                         preferred_element_type=jnp.float32)      # (N, Sq, D)
        y = y + jnp.dot(ctx.reshape(NSq, D), wfc_ref[sl, :],
                        preferred_element_type=jnp.float32)       # (N*Sq, E)

    o_ref[...] = (y + bfc_ref[...]).astype(o_ref.dtype)


@functools.partial(jax.jit, static_argnums=(8,))
def self_attention_forward(values, keys, query, w_v, w_k, w_q, w_fc, b_fc, heads):
    """Pallas version of SelfAttention.forward (single fused kernel, 1 grid step)."""
    N, Sq, E = query.shape
    Sk = keys.shape[1]
    Sv = values.shape[1]
    D = E // heads
    assert D * heads == E, "embed_size must be divisible by heads"
    assert Sv == Sk, "value_len must equal key_len (required by the torch einsum)"

    # Host-side weight prep (compiled once under jit):
    #  * nn.Linear computes x @ W.T; expand the shared per-head (D, D) weight
    #    into a block-diagonal (E, E) matrix so one matmul projects all heads.
    #  * Fold the 1/sqrt(embed_size) attention scale (exactly as the reference
    #    module: embed_size, NOT head_dim) into the query projection weight.
    eye_h = jnp.eye(heads, dtype=query.dtype)
    scale = jnp.asarray(1.0 / math.sqrt(E), query.dtype)
    wq_big = jnp.kron(eye_h, w_q.T) * scale        # (E, E)
    wk_big = jnp.kron(eye_h, w_k.T)                # (E, E)
    wv_big = jnp.kron(eye_h, w_v.T)                # (E, E)
    wfc_t = w_fc.T                                 # (E, E), pre-transposed
    b_fc2 = b_fc.reshape(1, E)

    # Flatten (N, S) into sublanes so the kernel sees full-batch slabs.
    q2 = query.reshape(N * Sq, E)
    k2 = keys.reshape(N * Sk, E)
    v2 = values.reshape(N * Sv, E)

    kernel = functools.partial(_fused_self_attention_kernel, batch=N, heads=heads)
    out2 = pl.pallas_call(
        kernel,
        out_shape=jax.ShapeDtypeStruct((N * Sq, E), query.dtype),
        grid=(1,),
        in_specs=[
            pl.BlockSpec((N * Sq, E), lambda i: (0, 0)),
            pl.BlockSpec((N * Sk, E), lambda i: (0, 0)),
            pl.BlockSpec((N * Sv, E), lambda i: (0, 0)),
            pl.BlockSpec((E, E), lambda i: (0, 0)),   # wq (VMEM-resident)
            pl.BlockSpec((E, E), lambda i: (0, 0)),   # wk
            pl.BlockSpec((E, E), lambda i: (0, 0)),   # wv
            pl.BlockSpec((E, E), lambda i: (0, 0)),   # w_fc.T
            pl.BlockSpec((1, E), lambda i: (0, 0)),   # bias
        ],
        out_specs=pl.BlockSpec((N * Sq, E), lambda i: (0, 0)),
        compiler_params=pltpu.CompilerParams(
            dimension_semantics=("arbitrary",),
            # TODO(synk): re-derive this per generation when tiles grow
            # (64 MiB physical VMEM on v7x vs 128 MiB on v5e/v6e).
            vmem_limit_bytes=32 * 1024 * 1024),
    )(q2, k2, v2, wq_big, wk_big, wv_big, wfc_t, b_fc2)
    return out2.reshape(N, Sq, E)


def _reference(values, keys, query, w_v, w_k, w_q, w_fc, b_fc, heads):
    """Pure-JAX replica of the PyTorch forward for validation."""
    N, Sq, E = query.shape
    Sk, Sv = keys.shape[1], values.shape[1]
    D = E // heads
    v = values.reshape(N, Sv, heads, D) @ w_v.T
    k = keys.reshape(N, Sk, heads, D) @ w_k.T
    q = query.reshape(N, Sq, heads, D) @ w_q.T
    att = jnp.einsum('nqhd,nkhd->nhqk', q, k) / math.sqrt(E)
    att = jax.nn.softmax(att, axis=3)
    out = jnp.einsum('nhql,nlhd->nqhd', att, v).reshape(N, Sq, heads * D)
    return out @ w_fc.T + b_fc


if __name__ == "__main__":
    embed_size, heads = 32, 4
    head_dim = embed_size // heads
    N, S = 2, 8

    key = jax.random.PRNGKey(0)
    ks = jax.random.split(key, 8)
    values = jax.random.normal(ks[0], (N, S, embed_size), jnp.float32)
    keys_in = jax.random.normal(ks[1], (N, S, embed_size), jnp.float32)
    query = jax.random.normal(ks[2], (N, S, embed_size), jnp.float32)

    # Deterministic synthetic parameters (torch.nn.Linear shapes: (out, in)).
    w_v = 0.1 * jax.random.normal(ks[3], (head_dim, head_dim), jnp.float32)
    w_k = 0.1 * jax.random.normal(ks[4], (head_dim, head_dim), jnp.float32)
    w_q = 0.1 * jax.random.normal(ks[5], (head_dim, head_dim), jnp.float32)
    w_fc = 0.1 * jax.random.normal(ks[6], (embed_size, heads * head_dim), jnp.float32)
    b_fc = 0.1 * jax.random.normal(ks[7], (embed_size,), jnp.float32)

    out = self_attention_forward(values, keys_in, query,
                                 w_v, w_k, w_q, w_fc, b_fc, heads)
    out = jax.block_until_ready(out)

    ref = _reference(values, keys_in, query, w_v, w_k, w_q, w_fc, b_fc, heads)
    assert out.shape == (N, S, embed_size)
    # Exact softmax divide + fp32 everywhere -> tight agreement with the
    # reference; real bugs would be orders of magnitude larger.
    assert jnp.allclose(out, ref, atol=1e-4, rtol=1e-4), "mismatch vs reference"

    print("KERNEL_OK")
</pallas_src>

<mosaic_0001>
module attributes {stable_mosaic.version = 11 : i64} {
  func.func @_fused_self_attention_kernel(%arg0: i32, %arg1: memref<16x32xf32, #tpu.memory_space<vmem>>, %arg2: memref<16x32xf32, #tpu.memory_space<vmem>>, %arg3: memref<16x32xf32, #tpu.memory_space<vmem>>, %arg4: memref<32x32xf32, #tpu.memory_space<vmem>>, %arg5: memref<32x32xf32, #tpu.memory_space<vmem>>, %arg6: memref<32x32xf32, #tpu.memory_space<vmem>>, %arg7: memref<32x32xf32, #tpu.memory_space<vmem>>, %arg8: memref<1x32xf32, #tpu.memory_space<vmem>>, %arg9: memref<16x32xf32, #tpu.memory_space<vmem>>) attributes {dimension_semantics = [#tpu.dimension_semantics<arbitrary>], iteration_bounds = array<i64: 1>, scalar_prefetch = 0 : i64, scratch_operands = 0 : i64, tpu.core_type = #tpu.core_type<tc>, window_params = [{pipeline_mode = #tpu.pipeline_mode<synchronous>, transform_indices = @transform_0, window_bounds = array<i64: 16, 32>}, {pipeline_mode = #tpu.pipeline_mode<synchronous>, transform_indices = @transform_1, window_bounds = array<i64: 16, 32>}, {pipeline_mode = #tpu.pipeline_mode<synchronous>, transform_indices = @transform_2, window_bounds = array<i64: 16, 32>}, {pipeline_mode = #tpu.pipeline_mode<synchronous>, transform_indices = @transform_3, window_bounds = array<i64: 32, 32>}, {pipeline_mode = #tpu.pipeline_mode<synchronous>, transform_indices = @transform_4, window_bounds = array<i64: 32, 32>}, {pipeline_mode = #tpu.pipeline_mode<synchronous>, transform_indices = @transform_5, window_bounds = array<i64: 32, 32>}, {pipeline_mode = #tpu.pipeline_mode<synchronous>, transform_indices = @transform_6, window_bounds = array<i64: 32, 32>}, {pipeline_mode = #tpu.pipeline_mode<synchronous>, transform_indices = @transform_7, window_bounds = array<i64: 1, 32>}, {pipeline_mode = #tpu.pipeline_mode<synchronous>, transform_indices = @transform_8, window_bounds = array<i64: 16, 32>}]} {
    %c0 = arith.constant 0 : index
    %c0_0 = arith.constant 0 : index
    %0 = vector.load %arg1[%c0, %c0_0] : memref<16x32xf32, #tpu.memory_space<vmem>>, vector<16x32xf32>
    %c0_1 = arith.constant 0 : index
    %c0_2 = arith.constant 0 : index
    %1 = vector.load %arg4[%c0_1, %c0_2] : memref<32x32xf32, #tpu.memory_space<vmem>>, vector<32x32xf32>
    %cst = arith.constant dense<0.000000e+00> : vector<16x32xf32>
    %2 = tpu.matmul %0, %1, %cst {dimension_numbers = #tpu.dot_dimension_numbers<[1], [0], [0], [1], [0, 0, 1, 1], [], []>} : vector<16x32xf32>, vector<32x32xf32>, vector<16x32xf32> -> vector<16x32xf32>
    %c0_3 = arith.constant 0 : index
    %c0_4 = arith.constant 0 : index
    %3 = vector.load %arg2[%c0_3, %c0_4] : memref<16x32xf32, #tpu.memory_space<vmem>>, vector<16x32xf32>
    %c0_5 = arith.constant 0 : index
    %c0_6 = arith.constant 0 : index
    %4 = vector.load %arg5[%c0_5, %c0_6] : memref<32x32xf32, #tpu.memory_space<vmem>>, vector<32x32xf32>
    %cst_7 = arith.constant dense<0.000000e+00> : vector<16x32xf32>
    %5 = tpu.matmul %3, %4, %cst_7 {dimension_numbers = #tpu.dot_dimension_numbers<[1], [0], [0], [1], [0, 0, 1, 1], [], []>} : vector<16x32xf32>, vector<32x32xf32>, vector<16x32xf32> -> vector<16x32xf32>
    %c0_8 = arith.constant 0 : index
    %c0_9 = arith.constant 0 : index
    %6 = vector.load %arg3[%c0_8, %c0_9] : memref<16x32xf32, #tpu.memory_space<vmem>>, vector<16x32xf32>
    %c0_10 = arith.constant 0 : index
    %c0_11 = arith.constant 0 : index
    %7 = vector.load %arg6[%c0_10, %c0_11] : memref<32x32xf32, #tpu.memory_space<vmem>>, vector<32x32xf32>
    %cst_12 = arith.constant dense<0.000000e+00> : vector<16x32xf32>
    %8 = tpu.matmul %6, %7, %cst_12 {dimension_numbers = #tpu.dot_dimension_numbers<[1], [0], [0], [1], [0, 0, 1, 1], [], []>} : vector<16x32xf32>, vector<32x32xf32>, vector<16x32xf32> -> vector<16x32xf32>
    %9 = vector.shape_cast %2 : vector<16x32xf32> to vector<2x8x32xf32>
    %10 = vector.shape_cast %5 : vector<16x32xf32> to vector<2x8x32xf32>
    %11 = vector.shape_cast %8 : vector<16x32xf32> to vector<2x8x32xf32>
    %cst_13 = arith.constant 0.000000e+00 : f32
    %12 = vector.broadcast %cst_13 : f32 to vector<16x32xf32>
    %13 = vector.extract_strided_slice %9 {offsets = [0, 0, 0], sizes = [2, 8, 8], strides = [1, 1, 1]} : vector<2x8x32xf32> to vector<2x8x8xf32>
    %14 = vector.extract_strided_slice %10 {offsets = [0, 0, 0], sizes = [2, 8, 8], strides = [1, 1, 1]} : vector<2x8x32xf32> to vector<2x8x8xf32>
    "tpu.trace_start"() <{level = 10 : i32, message = "nqd,nkd->nqk"}> : () -> ()
    %cst_14 = arith.constant dense<0.000000e+00> : vector<2x8x8xf32>
    %15 = tpu.matmul %13, %14, %cst_14 {dimension_numbers = #tpu.dot_dimension_numbers<[2], [2], [1], [1], [0, 0, 0, 1, 1, 1], [0], [0]>} : vector<2x8x8xf32>, vector<2x8x8xf32>, vector<2x8x8xf32> -> vector<2x8x8xf32>
    "tpu.trace_stop"() : () -> ()
    %cst_15 = arith.constant dense<0xFF800000> : vector<2x8xf32>
    %16 = vector.multi_reduction <maximumf>, %15, %cst_15 [2] : vector<2x8x8xf32> to vector<2x8xf32>
    %17 = vector.shape_cast %16 : vector<2x8xf32> to vector<2x8x1xf32>
    %18 = vector.broadcast %17 : vector<2x8x1xf32> to vector<2x8x8xf32>
    %19 = arith.subf %15, %18 : vector<2x8x8xf32>
    %20 = math.exp %19 : vector<2x8x8xf32>
    %cst_16 = arith.constant dense<0.000000e+00> : vector<2x8xf32>
    %21 = vector.multi_reduction <add>, %20, %cst_16 [2] : vector<2x8x8xf32> to vector<2x8xf32>
    %22 = vector.shape_cast %21 : vector<2x8xf32> to vector<2x8x1xf32>
    %23 = vector.broadcast %22 : vector<2x8x1xf32> to vector<2x8x8xf32>
    %24 = arith.divf %20, %23 : vector<2x8x8xf32>
    %25 = vector.extract_strided_slice %11 {offsets = [0, 0, 0], sizes = [2, 8, 8], strides = [1, 1, 1]} : vector<2x8x32xf32> to vector<2x8x8xf32>
    "tpu.trace_start"() <{level = 10 : i32, message = "nqk,nkd->nqd"}> : () -> ()
    %cst_17 = arith.constant dense<0.000000e+00> : vector<2x8x8xf32>
    %26 = tpu.matmul %24, %25, %cst_17 {dimension_numbers = #tpu.dot_dimension_numbers<[2], [1], [1], [2], [0, 0, 0, 1, 1, 2], [0], [0]>} : vector<2x8x8xf32>, vector<2x8x8xf32>, vector<2x8x8xf32> -> vector<2x8x8xf32>
    "tpu.trace_stop"() : () -> ()
    %27 = vector.shape_cast %26 : vector<2x8x8xf32> to vector<16x8xf32>
    %c0_18 = arith.constant 0 : index
    %c0_19 = arith.constant 0 : index
    %28 = vector.load %arg7[%c0_18, %c0_19] : memref<32x32xf32, #tpu.memory_space<vmem>>, vector<8x32xf32>
    %cst_20 = arith.constant dense<0.000000e+00> : vector<16x32xf32>
    %29 = tpu.matmul %27, %28, %cst_20 {dimension_numbers = #tpu.dot_dimension_numbers<[1], [0], [0], [1], [0, 0, 1, 1], [], []>} : vector<16x8xf32>, vector<8x32xf32>, vector<16x32xf32> -> vector<16x32xf32>
    %30 = arith.addf %12, %29 : vector<16x32xf32>
    %31 = vector.extract_strided_slice %9 {offsets = [0, 0, 8], sizes = [2, 8, 8], strides = [1, 1, 1]} : vector<2x8x32xf32> to vector<2x8x8xf32>
    %32 = vector.extract_strided_slice %10 {offsets = [0, 0, 8], sizes = [2, 8, 8], strides = [1, 1, 1]} : vector<2x8x32xf32> to vector<2x8x8xf32>
    "tpu.trace_start"() <{level = 10 : i32, message = "nqd,nkd->nqk"}> : () -> ()
    %cst_21 = arith.constant dense<0.000000e+00> : vector<2x8x8xf32>
    %33 = tpu.matmul %31, %32, %cst_21 {dimension_numbers = #tpu.dot_dimension_numbers<[2], [2], [1], [1], [0, 0, 0, 1, 1, 1], [0], [0]>} : vector<2x8x8xf32>, vector<2x8x8xf32>, vector<2x8x8xf32> -> vector<2x8x8xf32>
    "tpu.trace_stop"() : () -> ()
    %cst_22 = arith.constant dense<0xFF800000> : vector<2x8xf32>
    %34 = vector.multi_reduction <maximumf>, %33, %cst_22 [2] : vector<2x8x8xf32> to vector<2x8xf32>
    %35 = vector.shape_cast %34 : vector<2x8xf32> to vector<2x8x1xf32>
    %36 = vector.broadcast %35 : vector<2x8x1xf32> to vector<2x8x8xf32>
    %37 = arith.subf %33, %36 : vector<2x8x8xf32>
    %38 = math.exp %37 : vector<2x8x8xf32>
    %cst_23 = arith.constant dense<0.000000e+00> : vector<2x8xf32>
    %39 = vector.multi_reduction <add>, %38, %cst_23 [2] : vector<2x8x8xf32> to vector<2x8xf32>
    %40 = vector.shape_cast %39 : vector<2x8xf32> to vector<2x8x1xf32>
    %41 = vector.broadcast %40 : vector<2x8x1xf32> to vector<2x8x8xf32>
    %42 = arith.divf %38, %41 : vector<2x8x8xf32>
    %43 = vector.extract_strided_slice %11 {offsets = [0, 0, 8], sizes = [2, 8, 8], strides = [1, 1, 1]} : vector<2x8x32xf32> to vector<2x8x8xf32>
    "tpu.trace_start"() <{level = 10 : i32, message = "nqk,nkd->nqd"}> : () -> ()
    %cst_24 = arith.constant dense<0.000000e+00> : vector<2x8x8xf32>
    %44 = tpu.matmul %42, %43, %cst_24 {dimension_numbers = #tpu.dot_dimension_numbers<[2], [1], [1], [2], [0, 0, 0, 1, 1, 2], [0], [0]>} : vector<2x8x8xf32>, vector<2x8x8xf32>, vector<2x8x8xf32> -> vector<2x8x8xf32>
    "tpu.trace_stop"() : () -> ()
    %45 = vector.shape_cast %44 : vector<2x8x8xf32> to vector<16x8xf32>
    %c8 = arith.constant 8 : index
    %c0_25 = arith.constant 0 : index
    %46 = vector.load %arg7[%c8, %c0_25] : memref<32x32xf32, #tpu.memory_space<vmem>>, vector<8x32xf32>
    %cst_26 = arith.constant dense<0.000000e+00> : vector<16x32xf32>
    %47 = tpu.matmul %45, %46, %cst_26 {dimension_numbers = #tpu.dot_dimension_numbers<[1], [0], [0], [1], [0, 0, 1, 1], [], []>} : vector<16x8xf32>, vector<8x32xf32>, vector<16x32xf32> -> vector<16x32xf32>
    %48 = arith.addf %30, %47 : vector<16x32xf32>
    %49 = vector.extract_strided_slice %9 {offsets = [0, 0, 16], sizes = [2, 8, 8], strides = [1, 1, 1]} : vector<2x8x32xf32> to vector<2x8x8xf32>
    %50 = vector.extract_strided_slice %10 {offsets = [0, 0, 16], sizes = [2, 8, 8], strides = [1, 1, 1]} : vector<2x8x32xf32> to vector<2x8x8xf32>
    "tpu.trace_start"() <{level = 10 : i32, message = "nqd,nkd->nqk"}> : () -> ()
    %cst_27 = arith.constant dense<0.000000e+00> : vector<2x8x8xf32>
    %51 = tpu.matmul %49, %50, %cst_27 {dimension_numbers = #tpu.dot_dimension_numbers<[2], [2], [1], [1], [0, 0, 0, 1, 1, 1], [0], [0]>} : vector<2x8x8xf32>, vector<2x8x8xf32>, vector<2x8x8xf32> -> vector<2x8x8xf32>
    "tpu.trace_stop"() : () -> ()
    %cst_28 = arith.constant dense<0xFF800000> : vector<2x8xf32>
    %52 = vector.multi_reduction <maximumf>, %51, %cst_28 [2] : vector<2x8x8xf32> to vector<2x8xf32>
    %53 = vector.shape_cast %52 : vector<2x8xf32> to vector<2x8x1xf32>
    %54 = vector.broadcast %53 : vector<2x8x1xf32> to vector<2x8x8xf32>
    %55 = arith.subf %51, %54 : vector<2x8x8xf32>
    %56 = math.exp %55 : vector<2x8x8xf32>
    %cst_29 = arith.constant dense<0.000000e+00> : vector<2x8xf32>
    %57 = vector.multi_reduction <add>, %56, %cst_29 [2] : vector<2x8x8xf32> to vector<2x8xf32>
    %58 = vector.shape_cast %57 : vector<2x8xf32> to vector<2x8x1xf32>
    %59 = vector.broadcast %58 : vector<2x8x1xf32> to vector<2x8x8xf32>
    %60 = arith.divf %56, %59 : vector<2x8x8xf32>
    %61 = vector.extract_strided_slice %11 {offsets = [0, 0, 16], sizes = [2, 8, 8], strides = [1, 1, 1]} : vector<2x8x32xf32> to vector<2x8x8xf32>
    "tpu.trace_start"() <{level = 10 : i32, message = "nqk,nkd->nqd"}> : () -> ()
    %cst_30 = arith.constant dense<0.000000e+00> : vector<2x8x8xf32>
    %62 = tpu.matmul %60, %61, %cst_30 {dimension_numbers = #tpu.dot_dimension_numbers<[2], [1], [1], [2], [0, 0, 0, 1, 1, 2], [0], [0]>} : vector<2x8x8xf32>, vector<2x8x8xf32>, vector<2x8x8xf32> -> vector<2x8x8xf32>
    "tpu.trace_stop"() : () -> ()
    %63 = vector.shape_cast %62 : vector<2x8x8xf32> to vector<16x8xf32>
    %c16 = arith.constant 16 : index
    %c0_31 = arith.constant 0 : index
    %64 = vector.load %arg7[%c16, %c0_31] : memref<32x32xf32, #tpu.memory_space<vmem>>, vector<8x32xf32>
    %cst_32 = arith.constant dense<0.000000e+00> : vector<16x32xf32>
    %65 = tpu.matmul %63, %64, %cst_32 {dimension_numbers = #tpu.dot_dimension_numbers<[1], [0], [0], [1], [0, 0, 1, 1], [], []>} : vector<16x8xf32>, vector<8x32xf32>, vector<16x32xf32> -> vector<16x32xf32>
    %66 = arith.addf %48, %65 : vector<16x32xf32>
    %67 = vector.extract_strided_slice %9 {offsets = [0, 0, 24], sizes = [2, 8, 8], strides = [1, 1, 1]} : vector<2x8x32xf32> to vector<2x8x8xf32>
    %68 = vector.extract_strided_slice %10 {offsets = [0, 0, 24], sizes = [2, 8, 8], strides = [1, 1, 1]} : vector<2x8x32xf32> to vector<2x8x8xf32>
    "tpu.trace_start"() <{level = 10 : i32, message = "nqd,nkd->nqk"}> : () -> ()
    %cst_33 = arith.constant dense<0.000000e+00> : vector<2x8x8xf32>
    %69 = tpu.matmul %67, %68, %cst_33 {dimension_numbers = #tpu.dot_dimension_numbers<[2], [2], [1], [1], [0, 0, 0, 1, 1, 1], [0], [0]>} : vector<2x8x8xf32>, vector<2x8x8xf32>, vector<2x8x8xf32> -> vector<2x8x8xf32>
    "tpu.trace_stop"() : () -> ()
    %cst_34 = arith.constant dense<0xFF800000> : vector<2x8xf32>
    %70 = vector.multi_reduction <maximumf>, %69, %cst_34 [2] : vector<2x8x8xf32> to vector<2x8xf32>
    %71 = vector.shape_cast %70 : vector<2x8xf32> to vector<2x8x1xf32>
    %72 = vector.broadcast %71 : vector<2x8x1xf32> to vector<2x8x8xf32>
    %73 = arith.subf %69, %72 : vector<2x8x8xf32>
    %74 = math.exp %73 : vector<2x8x8xf32>
    %cst_35 = arith.constant dense<0.000000e+00> : vector<2x8xf32>
    %75 = vector.multi_reduction <add>, %74, %cst_35 [2] : vector<2x8x8xf32> to vector<2x8xf32>
    %76 = vector.shape_cast %75 : vector<2x8xf32> to vector<2x8x1xf32>
    %77 = vector.broadcast %76 : vector<2x8x1xf32> to vector<2x8x8xf32>
    %78 = arith.divf %74, %77 : vector<2x8x8xf32>
    %79 = vector.extract_strided_slice %11 {offsets = [0, 0, 24], sizes = [2, 8, 8], strides = [1, 1, 1]} : vector<2x8x32xf32> to vector<2x8x8xf32>
    "tpu.trace_start"() <{level = 10 : i32, message = "nqk,nkd->nqd"}> : () -> ()
    %cst_36 = arith.constant dense<0.000000e+00> : vector<2x8x8xf32>
    %80 = tpu.matmul %78, %79, %cst_36 {dimension_numbers = #tpu.dot_dimension_numbers<[2], [1], [1], [2], [0, 0, 0, 1, 1, 2], [0], [0]>} : vector<2x8x8xf32>, vector<2x8x8xf32>, vector<2x8x8xf32> -> vector<2x8x8xf32>
    "tpu.trace_stop"() : () -> ()
    %81 = vector.shape_cast %80 : vector<2x8x8xf32> to vector<16x8xf32>
    %c24 = arith.constant 24 : index
    %c0_37 = arith.constant 0 : index
    %82 = vector.load %arg7[%c24, %c0_37] : memref<32x32xf32, #tpu.memory_space<vmem>>, vector<8x32xf32>
    %cst_38 = arith.constant dense<0.000000e+00> : vector<16x32xf32>
    %83 = tpu.matmul %81, %82, %cst_38 {dimension_numbers = #tpu.dot_dimension_numbers<[1], [0], [0], [1], [0, 0, 1, 1], [], []>} : vector<16x8xf32>, vector<8x32xf32>, vector<16x32xf32> -> vector<16x32xf32>
    %84 = arith.addf %66, %83 : vector<16x32xf32>
    %c0_39 = arith.constant 0 : index
    %c0_40 = arith.constant 0 : index
    %85 = vector.load %arg8[%c0_39, %c0_40] : memref<1x32xf32, #tpu.memory_space<vmem>>, vector<1x32xf32>
    %86 = vector.broadcast %85 : vector<1x32xf32> to vector<16x32xf32>
    %87 = arith.addf %84, %86 : vector<16x32xf32>
    %c0_41 = arith.constant 0 : index
    %c0_42 = arith.constant 0 : index
    %88 = vector.load %arg9[%c0_41, %c0_42] : memref<16x32xf32, #tpu.memory_space<vmem>>, vector<16x32xf32>
    tpu.vector_store %arg9[%c0_41, %c0_42], %87 {strides = array<i32>} : memref<16x32xf32, #tpu.memory_space<vmem>>, vector<16x32xf32>,
    return
  }
  func.func @transform_0(%arg0: i32) -> (i32, i32) {
    %c0_i32 = arith.constant 0 : i32
    %c0_i32_0 = arith.constant 0 : i32
    %c0_i32_1 = arith.constant 0 : i32
    return %c0_i32, %c0_i32_0 : i32, i32
  }
  func.func @transform_1(%arg0: i32) -> (i32, i32) {
    %c0_i32 = arith.constant 0 : i32
    %c0_i32_0 = arith.constant 0 : i32
    %c0_i32_1 = arith.constant 0 : i32
    return %c0_i32, %c0_i32_0 : i32, i32
  }
  func.func @transform_2(%arg0: i32) -> (i32, i32) {
    %c0_i32 = arith.constant 0 : i32
    %c0_i32_0 = arith.constant 0 : i32
    %c0_i32_1 = arith.constant 0 : i32
    return %c0_i32, %c0_i32_0 : i32, i32
  }
  func.func @transform_3(%arg0: i32) -> (i32, i32) {
    %c0_i32 = arith.constant 0 : i32
    %c0_i32_0 = arith.constant 0 : i32
    %c0_i32_1 = arith.constant 0 : i32
    return %c0_i32, %c0_i32_0 : i32, i32
  }
  func.func @transform_4(%arg0: i32) -> (i32, i32) {
    %c0_i32 = arith.constant 0 : i32
    %c0_i32_0 = arith.constant 0 : i32
    %c0_i32_1 = arith.constant 0 : i32
    return %c0_i32, %c0_i32_0 : i32, i32
  }
  func.func @transform_5(%arg0: i32) -> (i32, i32) {
    %c0_i32 = arith.constant 0 : i32
    %c0_i32_0 = arith.constant 0 : i32
    %c0_i32_1 = arith.constant 0 : i32
    return %c0_i32, %c0_i32_0 : i32, i32
  }
  func.func @transform_6(%arg0: i32) -> (i32, i32) {
    %c0_i32 = arith.constant 0 : i32
    %c0_i32_0 = arith.constant 0 : i32
    %c0_i32_1 = arith.constant 0 : i32
    return %c0_i32, %c0_i32_0 : i32, i32
  }
  func.func @transform_7(%arg0: i32) -> (i32, i32) {
    %c0_i32 = arith.constant 0 : i32
    %c0_i32_0 = arith.constant 0 : i32
    %c0_i32_1 = arith.constant 0 : i32
    return %c0_i32, %c0_i32_0 : i32, i32
  }
  func.func @transform_8(%arg0: i32) -> (i32, i32) {
    %c0_i32 = arith.constant 0 : i32
    %c0_i32_0 = arith.constant 0 : i32
    %c0_i32_1 = arith.constant 0 : i32
    return %c0_i32, %c0_i32_0 : i32, i32
  }
}

</mosaic_0001>

<bundles_post_ra>
// kernel: self_attention_forward.1
= control target key start
LH: loop header
LB: loop body
LE: loop exit
PB: predicated region body
PF: predicated region fallthrough
CT: control target
= control target key end

     0   :  { %vm36_vm0 = vcmask 261120   ;;  %s1253_s0 = inlined_call_operand.vmem [shape: f32[16,32], index: 0, kind: input, shape index: {}]   ;;  %s1254_s1 = inlined_call_operand.vmem [shape: f32[16,32], index: 1, kind: input, shape index: {}]   ;;  %s1255_s2 = inlined_call_operand.vmem [shape: f32[16,32], index: 2, kind: input, shape index: {}]   ;;  %s1256_s3 = inlined_call_operand.vmem [shape: f32[32,32], index: 3, kind: input, shape index: {}]   ;;  %s1257_s4 = inlined_call_operand.vmem [shape: f32[32,32], index: 4, kind: input, shape index: {}]   ;;  %s1258_s5 = inlined_call_operand.vmem [shape: f32[32,32], index: 5, kind: input, shape index: {}]   ;;  %s1259_s6 = inlined_call_operand.vmem [shape: f32[32,32], index: 6, kind: input, shape index: {}]   ;;  %s1260_s7 = inlined_call_operand.vmem [shape: f32[1,32], index: 7, kind: input, shape index: {}]   ;;  %s1261_s8 = inlined_call_operand.hbm [shape: f32[16,32], index: 8, kind: output, shape index: {}]  }
   0x1   :  { %v71_v0 = vld [vmem:[%s1257_s4 + $0x18] sm:$0xff]  ;;  %v70_v1 = vld [vmem:[%s1257_s4 + $0x10] sm:$0xff]  ;;  %v69_v4 = vld [vmem:[%s1257_s4 + $0x8] sm:$0xff] }
   0x2   :  { %v35_v2 = vld [vmem:[%s1256_s3 + $0x18] sm:$0xff]  ;;  %90 = vmatpush.msra.mxu1 %v71_v0  ;;  %v34_v3 = vld [vmem:[%s1256_s3 + $0x10] sm:$0xff]  ;;  %v33_v5 = vld [vmem:[%s1256_s3 + $0x8] sm:$0xff] }
   0x3   :  { %55 = vmatpush.msra.mxu0 %v35_v2  ;;  %v106_v6 = vld [vmem:[%s1258_s5 + $0x18] sm:$0xff]  ;;  %v105_v7 = vld [vmem:[%s1258_s5 + $0x10] sm:$0xff]  ;;  %v68_v8 = vld [vmem:[%s1257_s4] sm:$0xff] }
   0x4   :  { %91 = vmatpush.msra.mxu1 %v70_v1  ;;  %v32_v9 = vld [vmem:[%s1256_s3] sm:$0xff]  ;;  %125 = vmatpush.msra.mxu2 %v106_v6  ;;  %v104_v12 = vld [vmem:[%s1258_s5 + $0x8] sm:$0xff] }
   0x5   :  { %56 = vmatpush.msra.mxu0 %v34_v3  ;;  %v66_v10 = vld [vmem:[%s1254_s1] sm:$0xff] }
   0x6   :  { %92 = vmatpush.msra.mxu1 %v69_v4  ;;  %v30_v11 = vld [vmem:[%s1253_s0] sm:$0xff]  ;;  %126 = vmatpush.msra.mxu2 %v105_v7 }
   0x7   :  { %57 = vmatpush.msra.mxu0 %v33_v5 }
   0x8   :  { %13 = vsyncpa [#allocation3], 0  ;;  %93 = vmatpush.msra.mxu1 %v68_v8  ;;  %v103_v13 = vld [vmem:[%s1258_s5] sm:$0xff]  ;;  %127 = vmatpush.msra.mxu2 %v104_v12  ;;  %v67_v15 = vld [vmem:[%s1254_s1 + $0x8] sm:$0xff]  ;;  %vm136_vm1 = vcmask 64512   ;;  %s1011_s5 = smov 120  }
   0x9   :  { %58 = vmatpush.msra.mxu0 %v32_v9  ;;  %905 = vmatmul.msk.f32.vlgmr.msra.gmra.mxu1 %vm36_vm0, %v66_v10  ;;  %v101_v14 = vld [vmem:[%s1255_s2] sm:$0xff]  ;;  %v31_v16 = vld [vmem:[%s1253_s0 + $0x8] sm:$0xff]  ;;  %s1012_s0 = smov 112   ;;  %s1013_s19 = smov 104  }
   0xa   :  { %903 = vmatmul.msk.f32.vlgmr.msra.gmra.mxu0 %vm36_vm0, %v30_v11  ;;  %128 = vmatpush.msra.mxu2 %v103_v13  ;;  %v102_v29 = vld [vmem:[%s1255_s2 + $0x8] sm:$0xff]  ;;  %v283_v63 = vld [vmem:[%s1259_s6] sm:$0xff]  ;;  %s891_s29 = sshll.u32 %s1261_s8, 4  ;;  %s1016_s30 = smov 8   ;;  %s892_s29 = int_to_ptr.hbm [resolvable:$true] %s891_s29 }
   0xb   :  { %907 = vmatmul.msk.f32.vlgmr.msra.gmra.mxu2 %vm36_vm0, %v101_v14 }
  0x11   :  { %906 = vmatmul.msk.f32.gmra.mxu1 %vm36_vm0, %v67_v15 }
  0x12   :  { %904 = vmatmul.msk.f32.gmra.mxu0 %vm36_vm0, %v31_v16 }
  0x13   :  { %908 = vmatmul.msk.f32.gmra.mxu2 %vm36_vm0, %v102_v29 }
  0x86   :  { %v1118_v17 = vpop.f32.mrf.mxu1 }
  0x87   :  { %286 = vrot.lane.b32.xlu0 %v1118_v17, %s1011_s5  ;;  %909 = vmatpush.xpose.msk.msrb.mxu0 %vm136_vm1, %v1118_v17  ;;  %v1124_v18 = vpop.f32.mrf.mxu0 }
  0x8a   :  { %910 = vmatmul.msk.f32.vlgmr.msrb.gmra.mxu0 %vm136_vm1, %v1124_v18 }
  0x8e   :  { %v1130_v19 = vpop.f32.mrf.mxu2  ;;  %v1138_v20 = vpop.f32.mrf.mxu1 }
  0x8f   :  { %284 = vrot.lane.b32.xlu0 %v1124_v18, %s1011_s5  ;;  %911 = vmatpush.xpose.msk.msra.mxu3 %vm136_vm1, %v1138_v20  ;;  %v1143_v21 = vpop.f32.mrf.mxu0 }
  0x92   :  { %912 = vmatmul.msk.f32.vlgmr.msra.gmra.mxu3 %vm136_vm1, %v1143_v21 }
  0x93   :  { %255 = vmatpush.msrb.mxu3 %v1130_v19 }
  0x96   :  { %v1159_v37 = vpop.f32.mrf.mxu2 }
  0x97   :  { %389 = vrot.lane.b32.xlu0 %v1130_v19, %s1011_s5  ;;  %278 = vmatpush.msra.mxu0 %v1159_v37 }
  0x9f   :  { %503 = vrot.lane.b32.xlu0 %v1118_v17, %s1012_s0 }
  0xa7   :  { %501 = vrot.lane.b32.xlu0 %v1124_v18, %s1012_s0 }
  0xf9   :  { %v287_v22 = vpop.permute.xlu0 %286 }
  0xfa   :  { %915 = vmatpush.xpose.msk.msrb.mxu1 %vm136_vm1, %v287_v22 }
 0x101   :  { %v285_v23 = vpop.permute.xlu0 %284 }
 0x102   :  { %916 = vmatmul.msk.f32.vlgmr.msrb.gmra.mxu1 %vm136_vm1, %v285_v23 }
 0x107   :  { %v160_v24 = vpop.f32.mrf.mxu0 }
 0x108   :  { %v189_v25 = vsel %vm136_vm1, %v160_v24, -inf }
 0x109   :  { %v390_v26 = vpop.permute.xlu0 %389  ;;  %190 = vmax.xlane.f32.xlu1 %v189_v25 }
 0x10a   :  { %410 = vmatpush.msra.mxu3 %v390_v26 }
 0x111   :  { %v504_v56 = vpop.permute.xlu0 %503 }
 0x115   :  { %v186_v27 = vpop.f32.mrf.mxu3 }
 0x116   :  { %v192_v28 = vsel %vm136_vm1, %v186_v27, -inf }
 0x117   :  { %193 = vmax.xlane.f32.xlu0 %v192_v28 }
 0x119   :  { %v502_v57 = vpop.permute.xlu0 %501 }
 0x17c   :  { %v191_v30 = vpop.xlane.xlu1 %190 }
 0x17d   :  { %v195_v31 = vsub.f32 %v160_v24, %v191_v30 }
 0x17f   :  { %v197_v32 = vmul.f32 1.442695, %v195_v31  ;;  %v309_v33 = vpop.f32.mrf.mxu1  ;;  %v442_v31 = vld [vmem:[%s1259_s6 + $0x8] sm:$0xff] }
 0x180   :  { %v340_v34 = vsel %vm136_vm1, %v309_v33, -inf  ;;  %464 = vmatpush.msra.mxu1 %v442_v31 }
 0x181   :  { %953 = vpow2.f32 %v197_v32  ;;  %341 = vmax.xlane.f32.xlu1 %v340_v34 }
 0x187   :  { %v954_v35 = vpop.eup %953 }
 0x188   :  { %v201_v36 = vsel %vm136_vm1, %v954_v35, 0.0 }
 0x189   :  { %202 = vadd.xlane.f32.xlu2 %v201_v36 }
 0x18a   :  { %v194_v58 = vpop.xlane.xlu0 %193 }
 0x18b   :  { %v196_v59 = vsub.f32 %v186_v27, %v194_v58 }
 0x18d   :  { %v199_v60 = vmul.f32 1.442695, %v196_v59 }
 0x19a   :  { %314 = vrot.lane.b32.xlu1 %v1138_v20, %s1011_s5 }
 0x1f4   :  { %v342_v38 = vpop.xlane.xlu1 %341 }
 0x1f5   :  { %v346_v39 = vsub.f32 %v309_v33, %v342_v38 }
 0x1f7   :  { %v348_v40 = vmul.f32 1.442695, %v346_v39 }
 0x1f9   :  { %955 = vpow2.f32 %v348_v40 }
 0x1fc   :  { %v203_v41 = vpop.xlane.xlu2 %202 }
 0x1fd   :  { %957 = vrcp.f32 %v203_v41  ;;  %v218_v47 = vand.u32 2147483648, %v203_v41  ;;  %v216_v49 = vand.u32 2147483647, %v203_v41  ;;  %vm212_vm3 = vweird.f32 %v203_v41 }
 0x1fe   :  { %959 = vpow2.f32 %v199_v60 }
 0x1ff   :  { %v956_v42 = vpop.eup %955  ;;  %v219_v51 = vor.u32 1.1754944e-38, %v218_v47  ;;  %vm217_vm5 = vcmp.eq.f32.partialorder %v216_v49, 8.507059e+37 }
 0x200   :  { %v352_v43 = vsel %vm136_vm1, %v956_v42, 0.0 }
 0x201   :  { %353 = vadd.xlane.f32.xlu2 %v352_v43 }
 0x203   :  { %v958_v44 = vpop.eup %957 }
 0x204   :  { %v208_v45 = vmul.f32 %v958_v44, %v203_v41  ;;  %vm213_vm2 = vweird.f32 %v958_v44  ;;  %v960_v61 = vpop.eup %959 }
 0x205   :  { %vm214_vm4 = vmor %vm212_vm3, %vm213_vm2  ;;  %v204_v62 = vsel %vm136_vm1, %v960_v61, 0.0 }
 0x206   :  { %v209_v46 = vsub.f32 1.0, %v208_v45 }
 0x208   :  { %v210_v48 = vmul.f32 %v958_v44, %v209_v46 }
 0x20a   :  { %v211_v50 = vadd.f32 %v958_v44, %v210_v48 }
 0x20c   :  { %v315_v52 = vpop.permute.xlu1 %314  ;;  %v215_v53 = vsel %vm214_vm4, %v958_v44, %v211_v50 }
 0x20d   :  { %917 = vmatpush.xpose.msk.msrb.mxu2 %vm136_vm1, %v315_v52  ;;  %v220_v54 = vsel %vm217_vm5, %v219_v51, %v215_v53 }
 0x20e   :  { %v221_v55 = vmul.f32 %v954_v35, %v220_v54 }
 0x210   :  { %913 = vmatmul.msk.f32.vlgmr.msrb.gmra.mxu3 %vm136_vm1, %v221_v55 }
 0x211   :  { %925 = vmatpush.xpose.msk.msrb.mxu3 %vm136_vm1, %v504_v56  ;;  %493 = vmatpush.msra.mxu2 %v283_v63 }
 0x219   :  { %312 = vrot.lane.b32.xlu2 %v1143_v21, %s1011_s5 }
 0x242   :  { %205 = vadd.xlane.f32.xlu2 %v204_v62 }
 0x274   :  { %v354_v0 = vpop.xlane.xlu2 %353 }
 0x275   :  { %961 = vrcp.f32 %v354_v0  ;;  %v369_v5 = vand.u32 2147483648, %v354_v0  ;;  %v367_v7 = vand.u32 2147483647, %v354_v0  ;;  %vm363_vm7 = vweird.f32 %v354_v0 }
 0x277   :  { %v370_v9 = vor.u32 1.1754944e-38, %v369_v5  ;;  %vm368_vm9 = vcmp.eq.f32.partialorder %v367_v7, 8.507059e+37 }
 0x27b   :  { %v962_v1 = vpop.eup %961 }
 0x27c   :  { %v359_v2 = vmul.f32 %v962_v1, %v354_v0  ;;  %v313_v3 = vpop.permute.xlu2 %312  ;;  %vm364_vm6 = vweird.f32 %v962_v1 }
 0x27d   :  { %918 = vmatmul.msk.f32.vlgmr.msrb.gmra.mxu2 %vm136_vm1, %v313_v3  ;;  %vm365_vm8 = vmor %vm363_vm7, %vm364_vm6 }
 0x27e   :  { %v360_v4 = vsub.f32 1.0, %v359_v2 }
 0x280   :  { %v361_v6 = vmul.f32 %v962_v1, %v360_v4 }
 0x282   :  { %v362_v8 = vadd.f32 %v962_v1, %v361_v6 }
 0x284   :  { %v366_v10 = vsel %vm365_vm8, %v962_v1, %v362_v8 }
 0x285   :  { %v371_v11 = vsel %vm368_vm9, %v370_v9, %v366_v10 }
 0x286   :  { %v372_v12 = vmul.f32 %v956_v42, %v371_v11 }
 0x288   :  { %919 = vmatmul.msk.f32.vlgmr.msra.gmra.mxu3 %vm136_vm1, %v372_v12 }
 0x290   :  { %926 = vmatmul.msk.f32.vlgmr.msrb.gmra.mxu3 %vm136_vm1, %v502_v57 }
 0x293   :  { %v257_v13 = vpop.f32.mrf.mxu3 }
 0x294   :  { %923 = vmatmul.msk.f32.vlgmr.msra.gmra.mxu2 %vm136_vm1, %v257_v13  ;;  %v657_v13 = vld [vmem:[%s1259_s6 + $0x10] sm:$0xff] }
 0x295   :  { %679 = vmatpush.msrb.mxu1 %v657_v13 }
 0x2b5   :  { %v206_v14 = vpop.xlane.xlu2 %205 }
 0x2b6   :  { %963 = vrcp.f32 %v206_v14  ;;  %v233_v23 = vand.u32 2147483648, %v206_v14  ;;  %v231_v25 = vand.u32 2147483647, %v206_v14  ;;  %vm227_vm11 = vweird.f32 %v206_v14 }
 0x2b8   :  { %v234_v27 = vor.u32 1.1754944e-38, %v233_v23  ;;  %vm232_vm13 = vcmp.eq.f32.partialorder %v231_v25, 8.507059e+37 }
 0x2bc   :  { %v964_v15 = vpop.eup %963 }
 0x2bd   :  { %v223_v16 = vmul.f32 %v964_v15, %v206_v14  ;;  %vm228_vm10 = vweird.f32 %v964_v15 }
 0x2be   :  { %vm229_vm12 = vmor %vm227_vm11, %vm228_vm10 }
 0x2bf   :  { %v224_v22 = vsub.f32 1.0, %v223_v16 }
 0x2c1   :  { %v225_v24 = vmul.f32 %v964_v15, %v224_v22 }
 0x2c3   :  { %v226_v26 = vadd.f32 %v964_v15, %v225_v24 }
 0x2c5   :  { %v230_v28 = vsel %vm229_vm12, %v964_v15, %v226_v26 }
 0x2c6   :  { %v235_v29 = vsel %vm232_vm13, %v234_v27, %v230_v28 }
 0x2c7   :  { %v236_v30 = vmul.f32 %v960_v61, %v235_v29 }
 0x2c9   :  { %914 = vmatmul.msk.f32.vlgmr.msra.gmra.mxu0 %vm136_vm1, %v236_v30 }
 0x300   :  { %v337_v32 = vpop.f32.mrf.mxu2 }
 0x301   :  { %v343_v33 = vsel %vm136_vm1, %v337_v32, -inf }
 0x302   :  { %344 = vmax.xlane.f32.xlu1 %v343_v33 }
 0x30b   :  { %v412_v34 = vpop.f32.mrf.mxu3 }
 0x30c   :  { %921 = vmatmul.msk.f32.vlgmr.msra.gmra.mxu1 %vm136_vm1, %v412_v34 }
 0x313   :  { %v526_v35 = vpop.f32.mrf.mxu3 }
 0x314   :  { %v557_v36 = vsel %vm136_vm1, %v526_v35, -inf }
 0x315   :  { %558 = vmax.xlane.f32.xlu2 %v557_v36 }
 0x317   :  { %v1214_v15 = vpop.f32.mrf.mxu2 }
 0x31b   :  { %531 = vrot.lane.b32.xlu1 %v1138_v20, %s1012_s0 }
 0x32d   :  { %416 = vrot.lane.b32.xlu2 %v1159_v37, %s1011_s5 }
 0x335   :  { %529 = vrot.lane.b32.xlu2 %v1143_v21, %s1012_s0 }
 0x33d   :  { %717 = vrot.lane.b32.xlu2 %v1143_v21, %s1013_s19 }
 0x346   :  { %v280_v38 = vpop.f32.mrf.mxu0 }
 0x347   :  { %924 = vmatmul.msk.f32.gmra.mxu2 %vm136_vm1, %v280_v38 }
 0x375   :  { %v345_v39 = vpop.xlane.xlu1 %344 }
 0x376   :  { %v347_v40 = vsub.f32 %v337_v32, %v345_v39 }
 0x378   :  { %v350_v41 = vmul.f32 1.442695, %v347_v40 }
 0x37a   :  { %965 = vpow2.f32 %v350_v41 }
 0x380   :  { %v966_v42 = vpop.eup %965 }
 0x381   :  { %v355_v43 = vsel %vm136_vm1, %v966_v42, 0.0 }
 0x382   :  { %356 = vadd.xlane.f32.xlu0 %v355_v43 }
 0x388   :  { %v559_v44 = vpop.xlane.xlu2 %558 }
 0x389   :  { %v563_v45 = vsub.f32 %v526_v35, %v559_v44 }
 0x38b   :  { %v565_v46 = vmul.f32 1.442695, %v563_v45  ;;  %v947_v45 = vpack.i.bf16 %v1159_v37, %v1130_v19 }
 0x38d   :  { %967 = vpow2.f32 %v565_v46  ;;  %v532_v48 = vpop.permute.xlu1 %531 }
 0x390   :  { %v417_v47 = vpop.permute.xlu2 %416 }
 0x391   :  { %437 = vmatpush.msrb.mxu0 %v417_v47 }
 0x393   :  { %927 = vmatpush.xpose.msk.msra.mxu0 %vm136_vm1, %v532_v48  ;;  %v968_v21 = vpop.eup %967 }
 0x394   :  { %v569_v49 = vsel %vm136_vm1, %v968_v21, 0.0 }
 0x395   :  { %570 = vadd.xlane.f32.xlu1 %v569_v49 }
 0x396   :  { %605 = vrot.lane.b32.xlu0 %v1130_v19, %s1012_s0 }
 0x398   :  { %v530_v62 = vpop.permute.xlu2 %529 }
 0x39e   :  { %691 = vrot.lane.b32.xlu0 %v1118_v17, %s1013_s19 }
 0x3a0   :  { %v718_v12 = vpop.permute.xlu2 %717 }
 0x3a6   :  { %689 = vrot.lane.b32.xlu0 %v1124_v18, %s1013_s19 }
 0x3ae   :  { %719 = vrot.lane.b32.xlu1 %v1138_v20, %s1013_s19 }
 0x3ca   :  { %v1217_v23 = vpop.f32.mrf.mxu2 }
 0x3f5   :  { %v357_v50 = vpop.xlane.xlu0 %356 }
 0x3f6   :  { %969 = vrcp.f32 %v357_v50  ;;  %v384_v54 = vand.u32 2147483648, %v357_v50  ;;  %v382_v56 = vand.u32 2147483647, %v357_v50  ;;  %vm378_vm15 = vweird.f32 %v357_v50 }
 0x3f8   :  { %v385_v58 = vor.u32 1.1754944e-38, %v384_v54  ;;  %vm383_vm3 = vcmp.eq.f32.partialorder %v382_v56, 8.507059e+37 }
 0x3fc   :  { %v970_v51 = vpop.eup %969 }
 0x3fd   :  { %v374_v52 = vmul.f32 %v970_v51, %v357_v50  ;;  %vm379_vm14 = vweird.f32 %v970_v51 }
 0x3fe   :  { %vm380_vm2 = vmor %vm378_vm15, %vm379_vm14 }
 0x3ff   :  { %v375_v53 = vsub.f32 1.0, %v374_v52 }
 0x401   :  { %v376_v55 = vmul.f32 %v970_v51, %v375_v53 }
 0x403   :  { %v377_v57 = vadd.f32 %v970_v51, %v376_v55 }
 0x405   :  { %v381_v17 = vsel %vm380_vm2, %v970_v51, %v377_v57 }
 0x406   :  { %v386_v59 = vsel %vm383_vm3, %v385_v58, %v381_v17 }
 0x407   :  { %v387_v18 = vmul.f32 %v966_v42, %v386_v59 }
 0x408   :  { %v606_v60 = vpop.permute.xlu0 %605  ;;  %v571_v61 = vpop.xlane.xlu1 %570 }
 0x409   :  { %971 = vrcp.f32 %v571_v61  ;;  %920 = vmatmul.msk.f32.vlgmr.msrb.gmra.mxu0 %vm136_vm1, %v387_v18  ;;  %626 = vmatpush.msra.mxu3 %v606_v60  ;;  %v586_v2 = vand.u32 2147483648, %v571_v61  ;;  %v584_v4 = vand.u32 2147483647, %v571_v61  ;;  %vm580_vm5 = vweird.f32 %v571_v61 }
 0x40b   :  { %v587_v6 = vor.u32 1.1754944e-38, %v586_v2  ;;  %vm585_vm7 = vcmp.eq.f32.partialorder %v584_v4, 8.507059e+37 }
 0x40f   :  { %v972_v20 = vpop.eup %971 }
 0x410   :  { %v576_v63 = vmul.f32 %v972_v20, %v571_v61  ;;  %v692_v0 = vpop.permute.xlu0 %691  ;;  %vm581_vm4 = vweird.f32 %v972_v20 }
 0x411   :  { %928 = vmatmul.msk.f32.vlgmr.msra.gmra.mxu0 %vm136_vm1, %v530_v62  ;;  %933 = vmatpush.xpose.msk.msrb.mxu2 %vm136_vm1, %v692_v0  ;;  %vm582_vm6 = vmor %vm580_vm5, %vm581_vm4 }
 0x412   :  { %v577_v1 = vsub.f32 1.0, %v576_v63 }
 0x414   :  { %v578_v3 = vmul.f32 %v972_v20, %v577_v1 }
 0x416   :  { %v579_v5 = vadd.f32 %v972_v20, %v578_v3 }
 0x418   :  { %v583_v7 = vsel %vm582_vm6, %v972_v20, %v579_v5  ;;  %v690_v8 = vpop.permute.xlu0 %689 }
 0x419   :  { %v588_v9 = vsel %vm585_vm7, %v587_v6, %v583_v7  ;;  %934 = vmatmul.msk.f32.vlgmr.msrb.gmra.mxu2 %vm136_vm1, %v690_v8 }
 0x41a   :  { %v589_v10 = vmul.f32 %v968_v21, %v588_v9 }
 0x41c   :  { %929 = vmatmul.msk.f32.vlgmr.msra.gmra.mxu3 %vm136_vm1, %v589_v10 }
 0x420   :  { %v720_v11 = vpop.permute.xlu1 %719 }
 0x421   :  { %935 = vmatpush.xpose.msk.msrb.mxu3 %vm136_vm1, %v720_v11 }
 0x424   :  { %936 = vmatmul.msk.f32.vlgmr.msrb.gmra.mxu3 %vm136_vm1, %v718_v12 }
 0x486   :  { %v439_v14 = vpop.f32.mrf.mxu0 }
 0x487   :  { %922 = vmatmul.msk.f32.gmra.mxu1 %vm136_vm1, %v439_v14 }
 0x48e   :  { %v554_v16 = vpop.f32.mrf.mxu0 }
 0x48f   :  { %v560_v22 = vsel %vm136_vm1, %v554_v16, -inf }
 0x490   :  { %561 = vmax.xlane.f32.xlu1 %v560_v22  ;;  %v845_v22 = vld [vmem:[%s1259_s6 + $0x18] sm:$0xff]  ;;  %s1014_s6 = smov [#allocation2]  }
 0x491   :  { %867 = vmatpush.msra.mxu3 %v845_v22  ;;  %s889_s26 = sshll.u32 %s1014_s6, 4  ;;  %s890_s26 = int_to_ptr.vmem [resolvable:$true] %s889_s26 }
 0x49c   :  { %v714_v24 = vpop.f32.mrf.mxu2 }
 0x49d   :  { %v745_v25 = vsel %vm136_vm1, %v714_v24, -inf }
 0x49e   :  { %746 = vmax.xlane.f32.xlu0 %v745_v25 }
 0x49f   :  { %v628_v26 = vpop.f32.mrf.mxu3 }
 0x4a0   :  { %931 = vmatmul.msk.f32.vlgmr.msrb.gmra.mxu1 %vm136_vm1, %v628_v26 }
 0x4a7   :  { %v742_v27 = vpop.f32.mrf.mxu3 }
 0x4a8   :  { %v748_v28 = vsel %vm136_vm1, %v742_v27, -inf }
 0x4a9   :  { %749 = vmax.xlane.f32.xlu2 %v748_v28 }
 0x503   :  { %v562_v29 = vpop.xlane.xlu1 %561 }
 0x504   :  { %v564_v30 = vsub.f32 %v554_v16, %v562_v29 }
 0x506   :  { %v567_v31 = vmul.f32 1.442695, %v564_v30 }
 0x508   :  { %973 = vpow2.f32 %v567_v31 }
 0x50e   :  { %v974_v32 = vpop.eup %973 }
 0x50f   :  { %v572_v33 = vsel %vm136_vm1, %v974_v32, 0.0 }
 0x510   :  { %573 = vadd.xlane.f32.xlu1 %v572_v33 }
 0x511   :  { %v747_v34 = vpop.xlane.xlu0 %746 }
 0x512   :  { %v751_v35 = vsub.f32 %v714_v24, %v747_v34 }
 0x514   :  { %v753_v36 = vmul.f32 1.442695, %v751_v35 }
 0x516   :  { %975 = vpow2.f32 %v753_v36 }
 0x51c   :  { %v976_v38 = vpop.eup %975  ;;  %v750_v39 = vpop.xlane.xlu2 %749 }
 0x51d   :  { %v752_v40 = vsub.f32 %v742_v27, %v750_v39  ;;  %v757_v41 = vsel %vm136_vm1, %v976_v38, 0.0  ;;  %v466_v27 = vpop.f32.mrf.mxu1 }
 0x51e   :  { %758 = vadd.xlane.f32.xlu0 %v757_v41  ;;  %v496_v30 = vadd.f32 %v1214_v15, %v466_v27 }
 0x51f   :  { %v755_v42 = vmul.f32 1.442695, %v752_v40 }
 0x521   :  { %977 = vpow2.f32 %v755_v42 }
 0x525   :  { %v469_v28 = vpop.f32.mrf.mxu1 }
 0x527   :  { %v1224_v43 = vpop.eup %977 }
 0x528   :  { %v760_v44 = vsel %vm136_vm1, %v1224_v43, 0.0 }
 0x529   :  { %761 = vadd.xlane.f32.xlu2 %v760_v44  ;;  %631 = vrot.lane.b32.xlu1 %v1159_v37, %s1012_s0 }
 0x52d   :  { %v681_v29 = vpop.f32.mrf.mxu1 }
 0x52e   :  { %v687_v31 = vadd.f32 %v681_v29, %v496_v30 }
 0x532   :  { %948 = vrot.lane.b32.xlu0 %v947_v45, %s1013_s19 }
 0x583   :  { %v574_v46 = vpop.xlane.xlu1 %573 }
 0x584   :  { %979 = vrcp.f32 %v574_v46  ;;  %v601_v52 = vand.u32 2147483648, %v574_v46  ;;  %vm595_vm9 = vweird.f32 %v574_v46  ;;  %v599_v53 = vand.u32 2147483647, %v574_v46 }
 0x586   :  { %v602_v55 = vor.u32 1.1754944e-38, %v601_v52  ;;  %vm600_vm11 = vcmp.eq.f32.partialorder %v599_v53, 8.507059e+37 }
 0x58a   :  { %v980_v47 = vpop.eup %979 }
 0x58b   :  { %v591_v48 = vmul.f32 %v980_v47, %v574_v46  ;;  %vm596_vm8 = vweird.f32 %v980_v47 }
 0x58c   :  { %vm597_vm10 = vmor %vm595_vm9, %vm596_vm8 }
 0x58d   :  { %v592_v21 = vsub.f32 1.0, %v591_v48 }
 0x58f   :  { %v593_v49 = vmul.f32 %v980_v47, %v592_v21 }
 0x591   :  { %v594_v50 = vadd.f32 %v980_v47, %v593_v49  ;;  %v759_v51 = vpop.xlane.xlu0 %758 }
 0x592   :  { %981 = vrcp.f32 %v759_v51  ;;  %v774_v60 = vand.u32 2147483648, %v759_v51  ;;  %v772_v61 = vand.u32 2147483647, %v759_v51  ;;  %vm768_vm13 = vweird.f32 %v759_v51 }
 0x593   :  { %v598_v54 = vsel %vm597_vm10, %v980_v47, %v594_v50 }
 0x594   :  { %v603_v37 = vsel %vm600_vm11, %v602_v55, %v598_v54  ;;  %v775_v63 = vor.u32 1.1754944e-38, %v774_v60  ;;  %vm773_vm15 = vcmp.eq.f32.partialorder %v772_v61, 8.507059e+37 }
 0x595   :  { %v604_v17 = vmul.f32 %v974_v32, %v603_v37  ;;  %v952_v32 = vld [vmem:[%s1260_s7] ss:$0 sm:$0xff]  ;;  %s1015_s7 = smov 128  }
 0x598   :  { %v982_v19 = vpop.eup %981 }
 0x599   :  { %v764_v56 = vmul.f32 %v982_v19, %v759_v51  ;;  %vm769_vm12 = vweird.f32 %v982_v19 }
 0x59a   :  { %vm770_vm14 = vmor %vm768_vm13, %vm769_vm12 }
 0x59b   :  { %v765_v57 = vsub.f32 1.0, %v764_v56  ;;  %v632_v58 = vpop.permute.xlu1 %631 }
 0x59c   :  { %v762_v59 = vpop.xlane.xlu2 %761  ;;  %652 = vmatpush.msrb.mxu0 %v632_v58 }
 0x59d   :  { %v766_v18 = vmul.f32 %v982_v19, %v765_v57  ;;  %983 = vrcp.f32 %v762_v59  ;;  %930 = vmatmul.msk.f32.vlgmr.msrb.gmra.mxu0 %vm136_vm1, %v604_v17  ;;  %v789_v8 = vand.u32 2147483648, %v762_v59  ;;  %v787_v10 = vand.u32 2147483647, %v762_v59 }
 0x59e   :  { %vm783_vm3 = vweird.f32 %v762_v59 }
 0x59f   :  { %v767_v20 = vadd.f32 %v982_v19, %v766_v18  ;;  %v790_v12 = vor.u32 1.1754944e-38, %v789_v8  ;;  %vm788_vm5 = vcmp.eq.f32.partialorder %v787_v10, 8.507059e+37 }
 0x5a1   :  { %v771_v62 = vsel %vm770_vm14, %v982_v19, %v767_v20 }
 0x5a2   :  { %v776_v1 = vsel %vm773_vm15, %v775_v63, %v771_v62 }
 0x5a3   :  { %v984_v0 = vpop.eup %983  ;;  %v777_v7 = vmul.f32 %v976_v38, %v776_v1  ;;  %v499_v38 = vadd.f32 %v1217_v23, %v469_v28 }
 0x5a4   :  { %v779_v2 = vmul.f32 %v984_v0, %v762_v59  ;;  %v949_v3 = vpop.permute.xlu0 %948  ;;  %vm784_vm2 = vweird.f32 %v984_v0 }
 0x5a5   :  { %v951_v4 = vunpack.i.h.bf16 %v949_v3  ;;  %v950_v5 = vunpack.i.l.bf16 %v949_v3  ;;  %vm785_vm4 = vmor %vm783_vm3, %vm784_vm2 }
 0x5a6   :  { %v780_v6 = vsub.f32 1.0, %v779_v2 }
 0x5a7   :  { %814 = vmatpush.msra.mxu0 %v950_v5  ;;  %840 = vmatpush.msra.mxu2 %v951_v4 }
 0x5a8   :  { %v781_v9 = vmul.f32 %v984_v0, %v780_v6  ;;  %937 = vmatmul.msk.f32.vlgmr.msra.gmra.mxu0 %vm136_vm1, %v777_v7 }
 0x5aa   :  { %v782_v11 = vadd.f32 %v984_v0, %v781_v9 }
 0x5ac   :  { %v786_v13 = vsel %vm785_vm4, %v984_v0, %v782_v11 }
 0x5ad   :  { %v791_v14 = vsel %vm788_vm5, %v790_v12, %v786_v13 }
 0x5ae   :  { %v792_v16 = vmul.f32 %v1224_v43, %v791_v14 }
 0x5b0   :  { %938 = vmatmul.msk.f32.vlgmr.msra.gmra.mxu2 %vm136_vm1, %v792_v16 }
 0x61a   :  { %v654_v24 = vpop.f32.mrf.mxu0 }
 0x61b   :  { %932 = vmatmul.msk.f32.gmra.mxu1 %vm136_vm1, %v654_v24 }
 0x625   :  { %v816_v25 = vpop.f32.mrf.mxu0 }
 0x626   :  { %939 = vmatmul.msk.f32.vlgmr.msra.gmra.mxu3 %vm136_vm1, %v816_v25 }
 0x633   :  { %v842_v26 = vpop.f32.mrf.mxu2 }
 0x634   :  { %940 = vmatmul.msk.f32.gmra.mxu3 %vm136_vm1, %v842_v26 }
 0x698   :  { %v684_v36 = vpop.f32.mrf.mxu1 }
 0x699   :  { %v688_v39 = vadd.f32 %v684_v36, %v499_v38 }
 0x6a9   :  { %v869_v33 = vpop.f32.mrf.mxu3 }
 0x6aa   :  { %v875_v34 = vadd.f32 %v869_v33, %v687_v31 }
 0x6ac   :  { %v881_v35 = vadd.f32 %v952_v32, %v875_v34 }
 0x6ae   :  { %883 = vst.msk [vmem:[#allocation2] sm:$0xff] %vm36_vm0, %v881_v35 }
 0x6b7   :  { %v872_v15 = vpop.f32.mrf.mxu3 }
 0x6b8   :  { %v876_v40 = vadd.f32 %v872_v15, %v688_v39 }
 0x6ba   :  { %v882_v41 = vadd.f32 %v952_v32, %v876_v40 }
 0x6bc   :  { %884 = vst.msk [vmem:[#allocation2 + $0x8] sm:$0xff] %vm36_vm0, %v882_v41 }
 0x6bd   :  { %897 = dma.vmem_to_hbm [thread:$0]  %s890_s26, 256, %s892_s29, [#allocation3], %s1015_s7, %s1015_s7, %s1016_s30  }
 0x6be   :  { %1009 = dma.done.wait [#allocation3], 256  }
 0x6bf   :  { %1010 = vsyncadd [#allocation3], 4294967040 }
 0x6c0   :  { %902 = vsyncpa [#allocation3], 1 }

</bundles_post_ra>
